<compile_context>
chip_gen: v7x
topology: tpu7x:2x2x1
jax: 0.10.0
libtpu: 0.0.40
codegen_flags: <defaults>
</compile_context>

<pallas_src>
import functools
import math

import jax
import jax.numpy as jnp
from jax.experimental import pallas as pl
from jax.experimental.pallas import tpu as pltpu


# ----------------------------- small helpers --------------------------------

def _round_up(x, m):
    return (x + m - 1) // m * m


def _cdiv(a, b):
    return -(-a // b)


def _pad2d(a, rows, cols):
    return jnp.pad(a, ((0, rows - a.shape[0]), (0, cols - a.shape[1])))


def _sigmoid(v):
    # One EUP tanh instead of exp + f32 divide; exact in f32.
    return 0.5 * (jnp.tanh(0.5 * v) + 1.0)


def _mxu_width():
    """256 on v6e/v7x (2x256x256 MXU), 128 on earlier chips."""
    try:
        kind = jax.devices()[0].device_kind.lower()
    except Exception:
        return 128
    for tag in ("v6", "v7", "tpu7", "trillium"):
        if tag in kind:
            return 256
    return 128


def _vmem_capacity_bytes():
    try:
        return int(pltpu.get_tpu_info().vmem_capacity_bytes)
    except Exception:
        return 64 << 20  # conservative (v7x per-TC VMEM)


def _round_feature(d, mxu):
    # Small dims only need 128-lane alignment; larger dims get full MXU width.
    if d <= 128:
        return 128
    return _round_up(d, max(mxu, 128))


def _weight_vmem_bytes(Ep, Hp, weight_itemsize):
    w = (Ep * 3 * Hp + Hp * 2 * Hp + Hp * Hp) * weight_itemsize  # wx, urz, uh
    b = 3 * Hp * 4                                               # brz, bh (f32)
    return w + b


def _per_tile_vmem_bytes(TB, Ep, Hp):
    # Double-buffered I/O tiles: x (bf16), h (f32), out (f32).
    io = 2 * (TB * Ep * 2 + TB * Hp * 4 + TB * Hp * 4)
    # f32 temporaries: gx (3Hp), gh (2Hp), r/z/rh/h_tilde (~4 x Hp).
    tmp = TB * (3 + 2 + 4) * Hp * 4
    return io + tmp


def _pick_batch_tiling(B, Ep, Hp, weight_bytes, vmem_target):
    """Pick (TB, nb): smallest tile count whose footprint fits the target."""
    Bp0 = _round_up(max(B, 1), 8)
    max_nb = Bp0 // 8
    for nb in range(1, max_nb + 1):
        TB = _round_up(_cdiv(Bp0, nb), 8)
        if weight_bytes + _per_tile_vmem_bytes(TB, Ep, Hp) <= vmem_target:
            return TB, nb
    return 8, _cdiv(Bp0, 8)


# --------------------------------- kernel ------------------------------------

def _gru_cell_kernel(x_ref,     # (TB, Ep)     bf16  input tile (pre-cast on host)
                     h_ref,     # (TB, Hp)     f32   previous hidden tile
                     wx_ref,    # (Ep, 3*Hp)   bf16  [W_r | W_z | W_h] (transposed)
                     urz_ref,   # (Hp, 2*Hp)   bf16  [U_r | U_z]       (transposed)
                     brz_ref,   # (1, 2*Hp)    f32   [b_r | b_z]
                     uh_ref,    # (Hp, Hp)     bf16  U_h (transposed)
                     bh_ref,    # (1, Hp)      f32   b_h
                     out_ref):  # (TB, Hp)     new hidden tile
    Hp = out_ref.shape[-1]

    x = x_ref[...]          # already matmul dtype
    h = h_ref[...]          # f32

    # Fused x-side projection: one (TB, Ep) x (Ep, 3Hp) MXU pass, f32 accumulate.
    gx = jnp.dot(x, wx_ref[...], preferred_element_type=jnp.float32)       # (TB, 3Hp)
    # Fused h-side r/z projection + biases.
    gh = jnp.dot(h.astype(urz_ref.dtype), urz_ref[...],
                 preferred_element_type=jnp.float32) + brz_ref[...]        # (TB, 2Hp)

    # Lane-aligned gate slices (Hp is a multiple of 128).
    r = _sigmoid(gx[:, 0 * Hp:1 * Hp] + gh[:, 0 * Hp:1 * Hp])
    z = _sigmoid(gx[:, 1 * Hp:2 * Hp] + gh[:, 1 * Hp:2 * Hp])

    rh = (r * h).astype(uh_ref.dtype)
    h_tilde = jnp.tanh(gx[:, 2 * Hp:3 * Hp]
                       + jnp.dot(rh, uh_ref[...],
                                 preferred_element_type=jnp.float32)
                       + bh_ref[...])

    # out = (1 - z) * h + z * h~  ==  h + z * (h~ - h)   (one fewer VPU mul)
    out_ref[...] = (h + z * (h_tilde - h)).astype(out_ref.dtype)


# -------------------------------- wrapper -------------------------------------

def gru_hidden_forward(x, h, params, *, weight_dtype=jnp.bfloat16,
                       out_dtype=jnp.float32):
    """One GRU_Hidden step.  x: (B, E), h: (B, H)  ->  (B, H).

    weight_dtype=jnp.float32 is the bit-accuracy escape hatch (no bf16 operands).
    """
    B, E = x.shape
    Bh, H = h.shape
    assert Bh == B

    f32 = jnp.float32
    mxu = _mxu_width()
    Ep = _round_feature(E, mxu)
    Hp = _round_feature(H, mxu)

    # ---- host-side weight packing (per-gate padded -> aligned in-kernel slices)
    wx = jnp.concatenate([_pad2d(params["w_r"], Ep, Hp),
                          _pad2d(params["w_z"], Ep, Hp),
                          _pad2d(params["w_h"], Ep, Hp)],
                         axis=1).astype(weight_dtype)                    # (Ep, 3Hp)
    urz = jnp.concatenate([_pad2d(params["u_r"], Hp, Hp),
                           _pad2d(params["u_z"], Hp, Hp)],
                          axis=1).astype(weight_dtype)                   # (Hp, 2Hp)
    uh = _pad2d(params["u_h"], Hp, Hp).astype(weight_dtype)              # (Hp, Hp)
    brz = jnp.concatenate([jnp.pad(params["b_r"], (0, Hp - H)),
                           jnp.pad(params["b_z"], (0, Hp - H))]
                          ).reshape(1, 2 * Hp).astype(f32)               # (1, 2Hp)
    bh = jnp.pad(params["b_h"], (0, Hp - H)).reshape(1, Hp).astype(f32)  # (1, Hp)

    # ---- batch tiling from an explicit VMEM budget
    cap = _vmem_capacity_bytes()
    w_itemsize = jnp.dtype(weight_dtype).itemsize
    w_single = _weight_vmem_bytes(Ep, Hp, w_itemsize)
    TB, nb = _pick_batch_tiling(B, Ep, Hp, w_single, int(0.85 * cap))
    Bp = TB * nb

    # Pre-cast x to the matmul dtype on the host (halves its DMA + drops a cast).
    x_p = _pad2d(x, Bp, Ep).astype(weight_dtype)
    h_p = _pad2d(h.astype(f32), Bp, Hp)

    # Megacore batch sharding only pays once compute-bound; in the weight-BW
    # bound regime it would duplicate the weight HBM reads on both cores.
    semantics = ("parallel",) if (nb > 1 and B >= 512) else ("arbitrary",)

    def _build(single_buffer_weights):
        if single_buffer_weights:
            wkw = dict(pipeline_mode=pl.Buffered(1))   # grid-invariant -> 1 buffer
            w_bytes = w_single
        else:
            wkw = {}
            w_bytes = 2 * w_single
        est = w_bytes + _per_tile_vmem_bytes(TB, Ep, Hp)
        vmem_budget = min(cap, max(int(1.25 * est), 32 << 20))

        grid_spec = pltpu.PrefetchScalarGridSpec(
            num_scalar_prefetch=0,
            grid=(nb,),
            in_specs=[
                pl.BlockSpec((TB, Ep), lambda b: (b, 0)),              # x tile
                pl.BlockSpec((TB, Hp), lambda b: (b, 0)),              # h tile
                pl.BlockSpec((Ep, 3 * Hp), lambda b: (0, 0), **wkw),   # W_r|W_z|W_h
                pl.BlockSpec((Hp, 2 * Hp), lambda b: (0, 0), **wkw),   # U_r|U_z
                pl.BlockSpec((1, 2 * Hp), lambda b: (0, 0), **wkw),    # b_r|b_z
                pl.BlockSpec((Hp, Hp), lambda b: (0, 0), **wkw),       # U_h
                pl.BlockSpec((1, Hp), lambda b: (0, 0), **wkw),        # b_h
            ],
            out_specs=pl.BlockSpec((TB, Hp), lambda b: (b, 0)),
        )
        return pl.pallas_call(
            _gru_cell_kernel,
            out_shape=jax.ShapeDtypeStruct((Bp, Hp), out_dtype),
            grid_spec=grid_spec,
            compiler_params=pltpu.CompilerParams(
                dimension_semantics=semantics,
                vmem_limit_bytes=vmem_budget),
        )

    args = (x_p, h_p, wx, urz, brz, uh, bh)
    try:
        out_p = _build(True)(*args)
    except Exception:
        # Older JAX / Mosaic without single-buffer pipeline_mode support.
        out_p = _build(False)(*args)

    return out_p[:B, :H]


# ------------------------------ reference & init ------------------------------

def gru_hidden_reference(x, h, params, matmul_dtype=jnp.float32):
    """Pure-JAX reference mirroring the PyTorch forward.

    matmul_dtype=bfloat16 mimics the kernel's MXU input precision (f32 accum).
    """
    def mm(a, w):
        return jnp.dot(a.astype(matmul_dtype), w.astype(matmul_dtype),
                       preferred_element_type=jnp.float32)

    r = jax.nn.sigmoid(mm(x, params["w_r"]) + mm(h, params["u_r"]) + params["b_r"])
    z = jax.nn.sigmoid(mm(x, params["w_z"]) + mm(h, params["u_z"]) + params["b_z"])
    h_tilde = jnp.tanh(mm(x, params["w_h"]) + mm(r * h, params["u_h"])
                       + params["b_h"])
    return (1.0 - z) * h + z * h_tilde


def init_params(key, *, input_size, output_size):
    """Weights stored pre-transposed as (in, out); init matches the module."""
    k = math.sqrt(1.0 / output_size)
    keys = jax.random.split(key, 9)
    u = functools.partial(jax.random.uniform, dtype=jnp.float32, minval=-k, maxval=k)
    return {
        "w_r": u(keys[0], (input_size, output_size)),   # linear_W    (no bias)
        "w_z": u(keys[1], (input_size, output_size)),   # linear_W_z  (no bias)
        "w_h": u(keys[2], (input_size, output_size)),   # linear_W_h  (no bias)
        "u_r": u(keys[3], (output_size, output_size)),  # linear_U_r
        "u_z": u(keys[4], (output_size, output_size)),  # linear_U_z
        "u_h": u(keys[5], (output_size, output_size)),  # linear_U_h
        "b_r": u(keys[6], (output_size,)),
        "b_z": u(keys[7], (output_size,)),
        "b_h": u(keys[8], (output_size,)),
    }


if __name__ == "__main__":
    # Small shapes consistent with the module's forward signature.
    batch, input_size, output_size = 2, 32, 32

    key = jax.random.PRNGKey(0)
    kp, kx, kh = jax.random.split(key, 3)
    params = init_params(kp, input_size=input_size, output_size=output_size)

    x = jax.random.uniform(kx, (batch, input_size), jnp.float32, -1.0, 1.0)
    h = jax.random.uniform(kh, (batch, output_size), jnp.float32, -1.0, 1.0)

    out = gru_hidden_forward(x, h, params)
    jax.block_until_ready(out)

    # Tight check vs. a reference using the same (bf16-in / f32-acc) matmul
    # precision as the kernel, and a looser semantic check against pure f32.
    ref_bf16 = gru_hidden_reference(x, h, params, matmul_dtype=jnp.bfloat16)
    ref_f32 = gru_hidden_reference(x, h, params, matmul_dtype=jnp.float32)

    assert out.shape == (batch, output_size)
    assert jnp.allclose(out, ref_bf16, atol=1e-2, rtol=1e-2)
    assert jnp.allclose(out, ref_f32, atol=5e-2, rtol=5e-2)

    print("KERNEL_OK")
</pallas_src>

<mosaic_0001>
module attributes {stable_mosaic.version = 11 : i64} {
  func.func @_gru_cell_kernel(%arg0: i32, %arg1: memref<8x128xbf16, #tpu.memory_space<vmem>>, %arg2: memref<8x128xf32, #tpu.memory_space<vmem>>, %arg3: memref<128x384xbf16, #tpu.memory_space<vmem>>, %arg4: memref<128x256xbf16, #tpu.memory_space<vmem>>, %arg5: memref<1x256xf32, #tpu.memory_space<vmem>>, %arg6: memref<128x128xbf16, #tpu.memory_space<vmem>>, %arg7: memref<1x128xf32, #tpu.memory_space<vmem>>, %arg8: memref<8x128xf32, #tpu.memory_space<vmem>>) attributes {dimension_semantics = [#tpu.dimension_semantics<arbitrary>], iteration_bounds = array<i64: 1>, scalar_prefetch = 0 : i64, scratch_operands = 0 : i64, tpu.core_type = #tpu.core_type<tc>, window_params = [{transform_indices = @transform_0, window_bounds = array<i64: 8, 128>}, {transform_indices = @transform_1, window_bounds = array<i64: 8, 128>}, {pipeline_mode = #tpu.pipeline_mode<synchronous>, transform_indices = @transform_2, window_bounds = array<i64: 128, 384>}, {pipeline_mode = #tpu.pipeline_mode<synchronous>, transform_indices = @transform_3, window_bounds = array<i64: 128, 256>}, {pipeline_mode = #tpu.pipeline_mode<synchronous>, transform_indices = @transform_4, window_bounds = array<i64: 1, 256>}, {pipeline_mode = #tpu.pipeline_mode<synchronous>, transform_indices = @transform_5, window_bounds = array<i64: 128, 128>}, {pipeline_mode = #tpu.pipeline_mode<synchronous>, transform_indices = @transform_6, window_bounds = array<i64: 1, 128>}, {transform_indices = @transform_7, window_bounds = array<i64: 8, 128>}]} {
    %c0 = arith.constant 0 : index
    %c0_0 = arith.constant 0 : index
    %0 = vector.load %arg1[%c0, %c0_0] : memref<8x128xbf16, #tpu.memory_space<vmem>>, vector<8x128xbf16>
    %c0_1 = arith.constant 0 : index
    %c0_2 = arith.constant 0 : index
    %1 = vector.load %arg2[%c0_1, %c0_2] : memref<8x128xf32, #tpu.memory_space<vmem>>, vector<8x128xf32>
    %c0_3 = arith.constant 0 : index
    %c0_4 = arith.constant 0 : index
    %2 = vector.load %arg3[%c0_3, %c0_4] : memref<128x384xbf16, #tpu.memory_space<vmem>>, vector<128x384xbf16>
    %cst = arith.constant dense<0.000000e+00> : vector<8x384xf32>
    %3 = tpu.matmul %0, %2, %cst {dimension_numbers = #tpu.dot_dimension_numbers<[1], [0], [0], [1], [0, 0, 1, 1], [], []>} : vector<8x128xbf16>, vector<128x384xbf16>, vector<8x384xf32> -> vector<8x384xf32>
    %4 = arith.truncf %1 : vector<8x128xf32> to vector<8x128xbf16>
    %c0_5 = arith.constant 0 : index
    %c0_6 = arith.constant 0 : index
    %5 = vector.load %arg4[%c0_5, %c0_6] : memref<128x256xbf16, #tpu.memory_space<vmem>>, vector<128x256xbf16>
    %cst_7 = arith.constant dense<0.000000e+00> : vector<8x256xf32>
    %6 = tpu.matmul %4, %5, %cst_7 {dimension_numbers = #tpu.dot_dimension_numbers<[1], [0], [0], [1], [0, 0, 1, 1], [], []>} : vector<8x128xbf16>, vector<128x256xbf16>, vector<8x256xf32> -> vector<8x256xf32>
    %c0_8 = arith.constant 0 : index
    %c0_9 = arith.constant 0 : index
    %7 = vector.load %arg5[%c0_8, %c0_9] : memref<1x256xf32, #tpu.memory_space<vmem>>, vector<1x256xf32>
    %8 = vector.broadcast %7 : vector<1x256xf32> to vector<8x256xf32>
    %9 = arith.addf %6, %8 : vector<8x256xf32>
    %10 = vector.extract_strided_slice %3 {offsets = [0, 0], sizes = [8, 128], strides = [1, 1]} : vector<8x384xf32> to vector<8x128xf32>
    %11 = vector.extract_strided_slice %9 {offsets = [0, 0], sizes = [8, 128], strides = [1, 1]} : vector<8x256xf32> to vector<8x128xf32>
    %12 = arith.addf %10, %11 : vector<8x128xf32>
    %cst_10 = arith.constant 5.000000e-01 : f32
    %13 = vector.broadcast %cst_10 : f32 to vector<8x128xf32>
    %14 = arith.mulf %13, %12 : vector<8x128xf32>
    %15 = math.tanh %14 : vector<8x128xf32>
    %cst_11 = arith.constant 1.000000e+00 : f32
    %16 = vector.broadcast %cst_11 : f32 to vector<8x128xf32>
    %17 = arith.addf %15, %16 : vector<8x128xf32>
    %cst_12 = arith.constant 5.000000e-01 : f32
    %18 = vector.broadcast %cst_12 : f32 to vector<8x128xf32>
    %19 = arith.mulf %18, %17 : vector<8x128xf32>
    %20 = vector.extract_strided_slice %3 {offsets = [0, 128], sizes = [8, 128], strides = [1, 1]} : vector<8x384xf32> to vector<8x128xf32>
    %21 = vector.extract_strided_slice %9 {offsets = [0, 128], sizes = [8, 128], strides = [1, 1]} : vector<8x256xf32> to vector<8x128xf32>
    %22 = arith.addf %20, %21 : vector<8x128xf32>
    %cst_13 = arith.constant 5.000000e-01 : f32
    %23 = vector.broadcast %cst_13 : f32 to vector<8x128xf32>
    %24 = arith.mulf %23, %22 : vector<8x128xf32>
    %25 = math.tanh %24 : vector<8x128xf32>
    %cst_14 = arith.constant 1.000000e+00 : f32
    %26 = vector.broadcast %cst_14 : f32 to vector<8x128xf32>
    %27 = arith.addf %25, %26 : vector<8x128xf32>
    %cst_15 = arith.constant 5.000000e-01 : f32
    %28 = vector.broadcast %cst_15 : f32 to vector<8x128xf32>
    %29 = arith.mulf %28, %27 : vector<8x128xf32>
    %30 = arith.mulf %19, %1 : vector<8x128xf32>
    %31 = arith.truncf %30 : vector<8x128xf32> to vector<8x128xbf16>
    %32 = vector.extract_strided_slice %3 {offsets = [0, 256], sizes = [8, 128], strides = [1, 1]} : vector<8x384xf32> to vector<8x128xf32>
    %c0_16 = arith.constant 0 : index
    %c0_17 = arith.constant 0 : index
    %33 = vector.load %arg6[%c0_16, %c0_17] : memref<128x128xbf16, #tpu.memory_space<vmem>>, vector<128x128xbf16>
    %cst_18 = arith.constant dense<0.000000e+00> : vector<8x128xf32>
    %34 = tpu.matmul %31, %33, %cst_18 {dimension_numbers = #tpu.dot_dimension_numbers<[1], [0], [0], [1], [0, 0, 1, 1], [], []>} : vector<8x128xbf16>, vector<128x128xbf16>, vector<8x128xf32> -> vector<8x128xf32>
    %35 = arith.addf %32, %34 : vector<8x128xf32>
    %c0_19 = arith.constant 0 : index
    %c0_20 = arith.constant 0 : index
    %36 = vector.load %arg7[%c0_19, %c0_20] : memref<1x128xf32, #tpu.memory_space<vmem>>, vector<1x128xf32>
    %37 = vector.broadcast %36 : vector<1x128xf32> to vector<8x128xf32>
    %38 = arith.addf %35, %37 : vector<8x128xf32>
    %39 = math.tanh %38 : vector<8x128xf32>
    %40 = arith.subf %39, %1 : vector<8x128xf32>
    %41 = arith.mulf %29, %40 : vector<8x128xf32>
    %42 = arith.addf %1, %41 : vector<8x128xf32>
    %c0_21 = arith.constant 0 : index
    %c0_22 = arith.constant 0 : index
    %43 = vector.load %arg8[%c0_21, %c0_22] : memref<8x128xf32, #tpu.memory_space<vmem>>, vector<8x128xf32>
    tpu.vector_store %arg8[%c0_21, %c0_22], %42 {strides = array<i32>} : memref<8x128xf32, #tpu.memory_space<vmem>>, vector<8x128xf32>,
    return
  }
  func.func @transform_0(%arg0: i32) -> (i32, i32) {
    %c0_i32 = arith.constant 0 : i32
    %c0_i32_0 = arith.constant 0 : i32
    return %arg0, %c0_i32 : i32, i32
  }
  func.func @transform_1(%arg0: i32) -> (i32, i32) {
    %c0_i32 = arith.constant 0 : i32
    %c0_i32_0 = arith.constant 0 : i32
    return %arg0, %c0_i32 : i32, i32
  }
  func.func @transform_2(%arg0: i32) -> (i32, i32) {
    %c0_i32 = arith.constant 0 : i32
    %c0_i32_0 = arith.constant 0 : i32
    %c0_i32_1 = arith.constant 0 : i32
    return %c0_i32, %c0_i32_0 : i32, i32
  }
  func.func @transform_3(%arg0: i32) -> (i32, i32) {
    %c0_i32 = arith.constant 0 : i32
    %c0_i32_0 = arith.constant 0 : i32
    %c0_i32_1 = arith.constant 0 : i32
    return %c0_i32, %c0_i32_0 : i32, i32
  }
  func.func @transform_4(%arg0: i32) -> (i32, i32) {
    %c0_i32 = arith.constant 0 : i32
    %c0_i32_0 = arith.constant 0 : i32
    %c0_i32_1 = arith.constant 0 : i32
    return %c0_i32, %c0_i32_0 : i32, i32
  }
  func.func @transform_5(%arg0: i32) -> (i32, i32) {
    %c0_i32 = arith.constant 0 : i32
    %c0_i32_0 = arith.constant 0 : i32
    %c0_i32_1 = arith.constant 0 : i32
    return %c0_i32, %c0_i32_0 : i32, i32
  }
  func.func @transform_6(%arg0: i32) -> (i32, i32) {
    %c0_i32 = arith.constant 0 : i32
    %c0_i32_0 = arith.constant 0 : i32
    %c0_i32_1 = arith.constant 0 : i32
    return %c0_i32, %c0_i32_0 : i32, i32
  }
  func.func @transform_7(%arg0: i32) -> (i32, i32) {
    %c0_i32 = arith.constant 0 : i32
    %c0_i32_0 = arith.constant 0 : i32
    return %arg0, %c0_i32 : i32, i32
  }
}

module attributes {stable_mosaic.version = 11 : i64} {
  func.func @_gru_cell_kernel(%arg0: i32, %arg1: memref<8x128xbf16, #tpu.memory_space<vmem>>, %arg2: memref<8x128xf32, #tpu.memory_space<vmem>>, %arg3: memref<128x384xbf16, #tpu.memory_space<vmem>>, %arg4: memref<128x256xbf16, #tpu.memory_space<vmem>>, %arg5: memref<1x256xf32, #tpu.memory_space<vmem>>, %arg6: memref<128x128xbf16, #tpu.memory_space<vmem>>, %arg7: memref<1x128xf32, #tpu.memory_space<vmem>>, %arg8: memref<8x128xf32, #tpu.memory_space<vmem>>) attributes {dimension_semantics = [#tpu.dimension_semantics<arbitrary>], iteration_bounds = array<i64: 1>, scalar_prefetch = 0 : i64, scratch_operands = 0 : i64, tpu.core_type = #tpu.core_type<tc>, window_params = [{transform_indices = @transform_0, window_bounds = array<i64: 8, 128>}, {transform_indices = @transform_1, window_bounds = array<i64: 8, 128>}, {pipeline_mode = #tpu.pipeline_mode<synchronous>, transform_indices = @transform_2, window_bounds = array<i64: 128, 384>}, {pipeline_mode = #tpu.pipeline_mode<synchronous>, transform_indices = @transform_3, window_bounds = array<i64: 128, 256>}, {pipeline_mode = #tpu.pipeline_mode<synchronous>, transform_indices = @transform_4, window_bounds = array<i64: 1, 256>}, {pipeline_mode = #tpu.pipeline_mode<synchronous>, transform_indices = @transform_5, window_bounds = array<i64: 128, 128>}, {pipeline_mode = #tpu.pipeline_mode<synchronous>, transform_indices = @transform_6, window_bounds = array<i64: 1, 128>}, {transform_indices = @transform_7, window_bounds = array<i64: 8, 128>}]} {
    %c0 = arith.constant 0 : index
    %c0_0 = arith.constant 0 : index
    %0 = vector.load %arg1[%c0, %c0_0] : memref<8x128xbf16, #tpu.memory_space<vmem>>, vector<8x128xbf16>
    %c0_1 = arith.constant 0 : index
    %c0_2 = arith.constant 0 : index
    %1 = vector.load %arg2[%c0_1, %c0_2] : memref<8x128xf32, #tpu.memory_space<vmem>>, vector<8x128xf32>
    %c0_3 = arith.constant 0 : index
    %c0_4 = arith.constant 0 : index
    %2 = vector.load %arg3[%c0_3, %c0_4] : memref<128x384xbf16, #tpu.memory_space<vmem>>, vector<128x384xbf16>
    %cst = arith.constant dense<0.000000e+00> : vector<8x384xf32>
    %3 = tpu.matmul %0, %2, %cst {dimension_numbers = #tpu.dot_dimension_numbers<[1], [0], [0], [1], [0, 0, 1, 1], [], []>} : vector<8x128xbf16>, vector<128x384xbf16>, vector<8x384xf32> -> vector<8x384xf32>
    %4 = arith.truncf %1 : vector<8x128xf32> to vector<8x128xbf16>
    %c0_5 = arith.constant 0 : index
    %c0_6 = arith.constant 0 : index
    %5 = vector.load %arg4[%c0_5, %c0_6] : memref<128x256xbf16, #tpu.memory_space<vmem>>, vector<128x256xbf16>
    %cst_7 = arith.constant dense<0.000000e+00> : vector<8x256xf32>
    %6 = tpu.matmul %4, %5, %cst_7 {dimension_numbers = #tpu.dot_dimension_numbers<[1], [0], [0], [1], [0, 0, 1, 1], [], []>} : vector<8x128xbf16>, vector<128x256xbf16>, vector<8x256xf32> -> vector<8x256xf32>
    %c0_8 = arith.constant 0 : index
    %c0_9 = arith.constant 0 : index
    %7 = vector.load %arg5[%c0_8, %c0_9] : memref<1x256xf32, #tpu.memory_space<vmem>>, vector<1x256xf32>
    %8 = vector.broadcast %7 : vector<1x256xf32> to vector<8x256xf32>
    %9 = arith.addf %6, %8 : vector<8x256xf32>
    %10 = vector.extract_strided_slice %3 {offsets = [0, 0], sizes = [8, 128], strides = [1, 1]} : vector<8x384xf32> to vector<8x128xf32>
    %11 = vector.extract_strided_slice %9 {offsets = [0, 0], sizes = [8, 128], strides = [1, 1]} : vector<8x256xf32> to vector<8x128xf32>
    %12 = arith.addf %10, %11 : vector<8x128xf32>
    %cst_10 = arith.constant 5.000000e-01 : f32
    %13 = vector.broadcast %cst_10 : f32 to vector<8x128xf32>
    %14 = arith.mulf %13, %12 : vector<8x128xf32>
    %15 = math.tanh %14 : vector<8x128xf32>
    %cst_11 = arith.constant 1.000000e+00 : f32
    %16 = vector.broadcast %cst_11 : f32 to vector<8x128xf32>
    %17 = arith.addf %15, %16 : vector<8x128xf32>
    %cst_12 = arith.constant 5.000000e-01 : f32
    %18 = vector.broadcast %cst_12 : f32 to vector<8x128xf32>
    %19 = arith.mulf %18, %17 : vector<8x128xf32>
    %20 = vector.extract_strided_slice %3 {offsets = [0, 128], sizes = [8, 128], strides = [1, 1]} : vector<8x384xf32> to vector<8x128xf32>
    %21 = vector.extract_strided_slice %9 {offsets = [0, 128], sizes = [8, 128], strides = [1, 1]} : vector<8x256xf32> to vector<8x128xf32>
    %22 = arith.addf %20, %21 : vector<8x128xf32>
    %cst_13 = arith.constant 5.000000e-01 : f32
    %23 = vector.broadcast %cst_13 : f32 to vector<8x128xf32>
    %24 = arith.mulf %23, %22 : vector<8x128xf32>
    %25 = math.tanh %24 : vector<8x128xf32>
    %cst_14 = arith.constant 1.000000e+00 : f32
    %26 = vector.broadcast %cst_14 : f32 to vector<8x128xf32>
    %27 = arith.addf %25, %26 : vector<8x128xf32>
    %cst_15 = arith.constant 5.000000e-01 : f32
    %28 = vector.broadcast %cst_15 : f32 to vector<8x128xf32>
    %29 = arith.mulf %28, %27 : vector<8x128xf32>
    %30 = arith.mulf %19, %1 : vector<8x128xf32>
    %31 = arith.truncf %30 : vector<8x128xf32> to vector<8x128xbf16>
    %32 = vector.extract_strided_slice %3 {offsets = [0, 256], sizes = [8, 128], strides = [1, 1]} : vector<8x384xf32> to vector<8x128xf32>
    %c0_16 = arith.constant 0 : index
    %c0_17 = arith.constant 0 : index
    %33 = vector.load %arg6[%c0_16, %c0_17] : memref<128x128xbf16, #tpu.memory_space<vmem>>, vector<128x128xbf16>
    %cst_18 = arith.constant dense<0.000000e+00> : vector<8x128xf32>
    %34 = tpu.matmul %31, %33, %cst_18 {dimension_numbers = #tpu.dot_dimension_numbers<[1], [0], [0], [1], [0, 0, 1, 1], [], []>} : vector<8x128xbf16>, vector<128x128xbf16>, vector<8x128xf32> -> vector<8x128xf32>
    %35 = arith.addf %32, %34 : vector<8x128xf32>
    %c0_19 = arith.constant 0 : index
    %c0_20 = arith.constant 0 : index
    %36 = vector.load %arg7[%c0_19, %c0_20] : memref<1x128xf32, #tpu.memory_space<vmem>>, vector<1x128xf32>
    %37 = vector.broadcast %36 : vector<1x128xf32> to vector<8x128xf32>
    %38 = arith.addf %35, %37 : vector<8x128xf32>
    %39 = math.tanh %38 : vector<8x128xf32>
    %40 = arith.subf %39, %1 : vector<8x128xf32>
    %41 = arith.mulf %29, %40 : vector<8x128xf32>
    %42 = arith.addf %1, %41 : vector<8x128xf32>
    %c0_21 = arith.constant 0 : index
    %c0_22 = arith.constant 0 : index
    %43 = vector.load %arg8[%c0_21, %c0_22] : memref<8x128xf32, #tpu.memory_space<vmem>>, vector<8x128xf32>
    tpu.vector_store %arg8[%c0_21, %c0_22], %42 {strides = array<i32>} : memref<8x128xf32, #tpu.memory_space<vmem>>, vector<8x128xf32>,
    return
  }
  func.func @transform_0(%arg0: i32) -> (i32, i32) {
    %c0_i32 = arith.constant 0 : i32
    %c0_i32_0 = arith.constant 0 : i32
    return %arg0, %c0_i32 : i32, i32
  }
  func.func @transform_1(%arg0: i32) -> (i32, i32) {
    %c0_i32 = arith.constant 0 : i32
    %c0_i32_0 = arith.constant 0 : i32
    return %arg0, %c0_i32 : i32, i32
  }
  func.func @transform_2(%arg0: i32) -> (i32, i32) {
    %c0_i32 = arith.constant 0 : i32
    %c0_i32_0 = arith.constant 0 : i32
    %c0_i32_1 = arith.constant 0 : i32
    return %c0_i32, %c0_i32_0 : i32, i32
  }
  func.func @transform_3(%arg0: i32) -> (i32, i32) {
    %c0_i32 = arith.constant 0 : i32
    %c0_i32_0 = arith.constant 0 : i32
    %c0_i32_1 = arith.constant 0 : i32
    return %c0_i32, %c0_i32_0 : i32, i32
  }
  func.func @transform_4(%arg0: i32) -> (i32, i32) {
    %c0_i32 = arith.constant 0 : i32
    %c0_i32_0 = arith.constant 0 : i32
    %c0_i32_1 = arith.constant 0 : i32
    return %c0_i32, %c0_i32_0 : i32, i32
  }
  func.func @transform_5(%arg0: i32) -> (i32, i32) {
    %c0_i32 = arith.constant 0 : i32
    %c0_i32_0 = arith.constant 0 : i32
    %c0_i32_1 = arith.constant 0 : i32
    return %c0_i32, %c0_i32_0 : i32, i32
  }
  func.func @transform_6(%arg0: i32) -> (i32, i32) {
    %c0_i32 = arith.constant 0 : i32
    %c0_i32_0 = arith.constant 0 : i32
    %c0_i32_1 = arith.constant 0 : i32
    return %c0_i32, %c0_i32_0 : i32, i32
  }
  func.func @transform_7(%arg0: i32) -> (i32, i32) {
    %c0_i32 = arith.constant 0 : i32
    %c0_i32_0 = arith.constant 0 : i32
    return %arg0, %c0_i32 : i32, i32
  }
}

</mosaic_0001>

<bundles_post_ra>
// kernel: tpu_custom_call.1
= control target key start
LH: loop header
LB: loop body
LE: loop exit
PB: predicated region body
PF: predicated region fallthrough
CT: control target
= control target key end

     0   :  { %12 = vsyncpa [#allocation3], 0  ;;  %s1144_s0 = inlined_call_operand.hbm [shape: bf16[8,128], index: 0, kind: input, shape index: {}]   ;;  %s1145_s1 = inlined_call_operand.hbm [shape: f32[8,128], index: 1, kind: input, shape index: {}]   ;;  %s1146_s2 = inlined_call_operand.hbm [shape: bf16[128,384], index: 2, kind: input, shape index: {}]   ;;  %s1147_s3 = inlined_call_operand.hbm [shape: bf16[128,256], index: 3, kind: input, shape index: {}]   ;;  %s1148_s4 = inlined_call_operand.vmem [shape: f32[1,256], index: 4, kind: input, shape index: {}]   ;;  %s1149_s5 = inlined_call_operand.hbm [shape: bf16[128,128], index: 5, kind: input, shape index: {}]   ;;  %s1150_s6 = inlined_call_operand.vmem [shape: f32[1,128], index: 6, kind: input, shape index: {}]   ;;  %s1151_s7 = inlined_call_operand.hbm [shape: f32[8,128], index: 7, kind: output, shape index: {}]  }
   0x1   :  { %13 = vsyncpa [#allocation6], 0 }
   0x2   :  { %14 = vsyncpa [#allocation9], 0 }
   0x3   :  { %15 = vsyncpa [#allocation4], 0  ;;  %s970_s24 = smov [#allocation5]   ;;  %s971_s26 = smov [#allocation8]  }
   0x4   :  { %s32_s25 = sshll.u32 %s970_s24, 4  ;;  %s53_s27 = sshll.u32 %s971_s26, 4  ;;  %s33_s25 = int_to_ptr.vmem [resolvable:$true] %s32_s25  ;;  %s1025_s27 = int_to_ptr.vmem [resolvable:$true] %s53_s27 }
   0x5   :  { %s830_s30 = scalar_lea.hbm %s1145_s1, 128 }
   0x6   :  { %p831_p0 = scmp.ne.s32.totalorder %s1145_s1, %s830_s30  ;;  %p834_p1 = scmp.lt.u32.totalorder %s830_s30, %s1145_s1 }
   0x8   :  { %p836_p2 = pnand %p834_p1, %p831_p0 }
   0xa   :  { %839 = shalt.err (!%p836_p2)
}
   0xb   :  { %s840_s12 = scalar_lea.vmem %s33_s25, 128  ;;  %p845_p4 = scmp.lt.s32.totalorder %s33_s25, %s33_s25 }
   0xc   :  { %p841_p3 = scmp.ne.s32.totalorder %s33_s25, %s840_s12  ;;  %p846_p5 = scmp.lt.s32.totalorder %s840_s12, %s840_s12 }
   0xe   :  { %p847_p6 = por %p846_p5, %p845_p4 }
  0x10   :  { %p848_p7 = pnand %p847_p6, %p841_p3 }
  0x12   :  { %851 = shalt.err (!%p848_p7)
}
  0x13   :  { %35 = dma.hbm_to_vmem [thread:$0]  %s1145_s1, 128, %s33_s25, [#allocation6]  }
  0x14   :  { %s852_s17 = scalar_lea.hbm %s1147_s3, 2048 }
  0x15   :  { %p853_p8 = scmp.ne.s32.totalorder %s1147_s3, %s852_s17  ;;  %p856_p9 = scmp.lt.u32.totalorder %s852_s17, %s1147_s3 }
  0x17   :  { %p858_p10 = pnand %p856_p9, %p853_p8 }
  0x19   :  { %861 = shalt.err (!%p858_p10)
}
  0x1a   :  { %s862_s22 = scalar_lea.vmem %s1025_s27, 2048  ;;  %p867_p12 = scmp.lt.s32.totalorder %s1025_s27, %s1025_s27 }
  0x1b   :  { %p863_p11 = scmp.ne.s32.totalorder %s1025_s27, %s862_s22  ;;  %p868_p13 = scmp.lt.s32.totalorder %s862_s22, %s862_s22 }
  0x1d   :  { %p869_p0 = por %p868_p13, %p867_p12 }
  0x1f   :  { %p870_p1 = pnand %p869_p0, %p863_p11 }
  0x21   :  { %873 = shalt.err (!%p870_p1)
}
  0x22   :  { %s972_s1 = smov 128   ;;  %s973_s23 = smov 8  }
  0x23   :  { %59 = dma.hbm_to_vmem [thread:$0]  %s1147_s3, 2048, %s1025_s27, [#allocation9], %s972_s1, %s972_s1, %s973_s23  }
  0x24   :  { %s974_s26 = smov [#allocation2]   ;;  %s975_s29 = smov [#allocation7]  }
  0x25   :  { %s22_s28 = sshll.u32 %s974_s26, 4  ;;  %s41_s30 = sshll.u32 %s975_s29, 4  ;;  %s23_s28 = int_to_ptr.vmem [resolvable:$true] %s22_s28  ;;  %s1056_s30 = int_to_ptr.vmem [resolvable:$true] %s41_s30 }
  0x26   :  { %s874_s10 = scalar_lea.hbm %s1144_s0, 64 }
  0x27   :  { %p875_p2 = scmp.ne.s32.totalorder %s1144_s0, %s874_s10  ;;  %p878_p3 = scmp.lt.u32.totalorder %s874_s10, %s1144_s0 }
  0x29   :  { %p880_p4 = pnand %p878_p3, %p875_p2 }
  0x2b   :  { %883 = shalt.err (!%p880_p4)
}
  0x2c   :  { %s884_s3 = scalar_lea.vmem %s23_s28, 64  ;;  %p889_p6 = scmp.lt.s32.totalorder %s23_s28, %s23_s28 }
  0x2d   :  { %p885_p5 = scmp.ne.s32.totalorder %s23_s28, %s884_s3  ;;  %p890_p7 = scmp.lt.s32.totalorder %s884_s3, %s884_s3 }
  0x2f   :  { %p891_p8 = por %p890_p7, %p889_p6 }
  0x31   :  { %p892_p9 = pnand %p891_p8, %p885_p5 }
  0x33   :  { %895 = shalt.err (!%p892_p9)
}
  0x34   :  { %25 = dma.hbm_to_vmem [thread:$0]  %s1144_s0, 64, %s23_s28, [#allocation3]  }
  0x35   :  { %s896_s18 = scalar_lea.hbm %s1146_s2, 3072 }
  0x36   :  { %p897_p10 = scmp.ne.s32.totalorder %s1146_s2, %s896_s18  ;;  %p900_p11 = scmp.lt.u32.totalorder %s896_s18, %s1146_s2 }
  0x38   :  { %p902_p12 = pnand %p900_p11, %p897_p10 }
  0x3a   :  { %905 = shalt.err (!%p902_p12)
}
  0x3b   :  { %s906_s1 = scalar_lea.vmem %s1056_s30, 3072  ;;  %p911_p0 = scmp.lt.s32.totalorder %s1056_s30, %s1056_s30 }
  0x3c   :  { %p907_p13 = scmp.ne.s32.totalorder %s1056_s30, %s906_s1  ;;  %p912_p1 = scmp.lt.s32.totalorder %s906_s1, %s906_s1 }
  0x3e   :  { %p913_p2 = por %p912_p1, %p911_p0 }
  0x40   :  { %p914_p3 = pnand %p913_p2, %p907_p13 }
  0x42   :  { %917 = shalt.err (!%p914_p3)
}
  0x43   :  { %s976_s0 = smov 192   ;;  %s977_s23 = smov 12  }
  0x44   :  { %47 = dma.hbm_to_vmem [thread:$0]  %s1146_s2, 3072, %s1056_s30, [#allocation6], %s976_s0, %s976_s0, %s977_s23  }
  0x45   :  { %s978_s26 = smov [#allocation10]   ;;  %s918_s9 = scalar_lea.hbm %s1149_s5, 1024 }
  0x46   :  { %s67_s28 = sshll.u32 %s978_s26, 4  ;;  %p919_p4 = scmp.ne.s32.totalorder %s1149_s5, %s918_s9  ;;  %s68_s28 = int_to_ptr.vmem [resolvable:$true] %s67_s28 }
  0x47   :  { %p922_p5 = scmp.lt.u32.totalorder %s918_s9, %s1149_s5 }
  0x49   :  { %p924_p6 = pnand %p922_p5, %p919_p4 }
  0x4b   :  { %927 = shalt.err (!%p924_p6)
}
  0x4c   :  { %s928_s14 = scalar_lea.vmem %s68_s28, 1024  ;;  %p933_p8 = scmp.lt.s32.totalorder %s68_s28, %s68_s28 }
  0x4d   :  { %p929_p7 = scmp.ne.s32.totalorder %s68_s28, %s928_s14  ;;  %p934_p9 = scmp.lt.s32.totalorder %s928_s14, %s928_s14 }
  0x4f   :  { %p935_p10 = por %p934_p9, %p933_p8 }
  0x51   :  { %p936_p11 = pnand %p935_p10, %p929_p7 }
  0x53   :  { %939 = shalt.err (!%p936_p11)
}
  0x54   :  { %s979_s2 = smov 64   ;;  %s980_s30 = smov 4  }
  0x55   :  { %73 = dma.hbm_to_vmem [thread:$0]  %s1149_s5, 1024, %s68_s28, [#allocation9], %s979_s2, %s979_s2, %s980_s30  }
  0x56   :  { %962 = dma.done.wait [#allocation3], 64  }
  0x57   :  { %963 = vsyncadd [#allocation3], 4294967232 }
  0x58   :  { %964 = dma.done.wait [#allocation6], 3200  }
  0x59   :  { %965 = vsyncadd [#allocation6], 4294964096 }
  0x5a   :  { %966 = dma.done.wait [#allocation9], 3072  }
  0x5b   :  { %967 = vsyncadd [#allocation9], 4294964224  ;;  %v981_v0 = vmov 0   ;;  %v982_v1 = vmov 0.0   ;;  %vm983_vm0 = vmmov 0   ;;  %v816_v40 = vld [vmem:[#allocation10] sm:$0xff]   ;;  %v354_v53 = vlaneseq }
  0x5c   :  { %286 = vmatprep.mubr.bf16.mxu0 %v981_v0  ;;  %699 = vmatprep.subr.bf16.mxu1 %v982_v1  ;;  %v760_v2 = vld [vmem:[#allocation7 + $0x4] ss:$12 sps:$4 sm:$0xff]   ;;  %v762_v3 = vld [vmem:[#allocation7] ss:$12 sps:$4 sm:$0xff]   ;;  %v763_v4 = vld [vmem:[#allocation7 + $0x1c] ss:$12 sps:$4 sm:$0xff]  }
  0x5d   :  { %715 = vmatprep.mubr.msk.bf16.mxu1 %vm983_vm0, %v982_v1  ;;  %254 = vmatprep.subr.bf16.mxu0 %v760_v2  ;;  %v765_v5 = vld [vmem:[#allocation7 + $0x18] ss:$12 sps:$4 sm:$0xff]   ;;  %v766_v6 = vld [vmem:[#allocation7 + $0x34] ss:$12 sps:$4 sm:$0xff]   ;;  %v768_v7 = vld [vmem:[#allocation7 + $0x30] ss:$12 sps:$4 sm:$0xff]  }
  0x5e   :  { %255 = vmatpush1.bf16.msra.mxu0 %v762_v3  ;;  %v769_v8 = vld [vmem:[#allocation7 + $0x4c] ss:$12 sps:$4 sm:$0xff]   ;;  %v771_v9 = vld [vmem:[#allocation7 + $0x48] ss:$12 sps:$4 sm:$0xff]   ;;  %v772_v10 = vld [vmem:[#allocation7 + $0x64] ss:$12 sps:$4 sm:$0xff]  }
  0x5f   :  { %256 = vmatprep.subr.bf16.mxu0 %v763_v4  ;;  %v774_v11 = vld [vmem:[#allocation7 + $0x60] ss:$12 sps:$4 sm:$0xff]   ;;  %v775_v12 = vld [vmem:[#allocation7 + $0x7c] ss:$12 sps:$4 sm:$0xff]   ;;  %v777_v13 = vld [vmem:[#allocation7 + $0x78] ss:$12 sps:$4 sm:$0xff]  }
  0x60   :  { %v778_v14 = vld [vmem:[#allocation7 + $0x94] ss:$12 sps:$4 sm:$0xff]   ;;  %v780_v15 = vld [vmem:[#allocation7 + $0x90] ss:$12 sps:$4 sm:$0xff]   ;;  %v781_v17 = vld [vmem:[#allocation7 + $0xac] ss:$12 sps:$4 sm:$0xff]  }
  0x61   :  { %v808_v16 = vld [vmem:[#allocation7 + $0x8] ss:$12 sps:$4 sm:$0xff]   ;;  %v809_v18 = vld [vmem:[#allocation7 + $0x20] ss:$12 sps:$4 sm:$0xff]   ;;  %v810_v21 = vld [vmem:[#allocation7 + $0x38] ss:$12 sps:$4 sm:$0xff]  }
  0x62   :  { %257 = vmatpush1.bf16.msra.mxu0 %v765_v5  ;;  %700 = vmatpush3.bf16.msra.mxu1 %v808_v16  ;;  %v783_v19 = vld [vmem:[#allocation7 + $0xa8] ss:$12 sps:$4 sm:$0xff]   ;;  %v786_v20 = vld [vmem:[#allocation8 + $0x4] ss:$8 sps:$4 sm:$0xff]   ;;  %v811_v25 = vld [vmem:[#allocation7 + $0x50] ss:$12 sps:$4 sm:$0xff]  }
  0x63   :  { %258 = vmatprep.subr.bf16.mxu0 %v766_v6  ;;  %701 = vmatprep.subr.bf16.mxu1 %v982_v1  ;;  %v784_v22 = vld [vmem:[#allocation8] ss:$8 sps:$4 sm:$0xff]   ;;  %v92_v23 = vld [vmem:[#allocation2] sm:$0xf]  ;;  %v787_v26 = vld [vmem:[#allocation8 + $0x10] ss:$8 sps:$4 sm:$0xff]  }
  0x64   :  { %v789_v24 = vld [vmem:[#allocation8 + $0x14] ss:$8 sps:$4 sm:$0xff]   ;;  %v792_v27 = vld [vmem:[#allocation8 + $0x24] ss:$8 sps:$4 sm:$0xff]   ;;  %v790_v29 = vld [vmem:[#allocation8 + $0x20] ss:$8 sps:$4 sm:$0xff]  }
  0x65   :  { %v812_v28 = vld [vmem:[#allocation7 + $0x68] ss:$12 sps:$4 sm:$0xff]   ;;  %v813_v31 = vld [vmem:[#allocation7 + $0x80] ss:$12 sps:$4 sm:$0xff]   ;;  %v793_v32 = vld [vmem:[#allocation8 + $0x30] ss:$8 sps:$4 sm:$0xff]  }
  0x66   :  { %259 = vmatpush1.bf16.msra.mxu0 %v768_v7  ;;  %702 = vmatpush3.bf16.msra.mxu1 %v809_v18  ;;  %v795_v30 = vld [vmem:[#allocation8 + $0x34] ss:$8 sps:$4 sm:$0xff]   ;;  %v798_v33 = vld [vmem:[#allocation8 + $0x44] ss:$8 sps:$4 sm:$0xff]   ;;  %v796_v35 = vld [vmem:[#allocation8 + $0x40] ss:$8 sps:$4 sm:$0xff]  }
  0x67   :  { %260 = vmatprep.subr.bf16.mxu0 %v769_v8  ;;  %703 = vmatprep.subr.bf16.mxu1 %v982_v1  ;;  %v814_v34 = vld [vmem:[#allocation7 + $0x98] ss:$12 sps:$4 sm:$0xff]   ;;  %v801_v36 = vld [vmem:[#allocation8 + $0x54] ss:$8 sps:$4 sm:$0xff]   ;;  %v802_v41 = vld [vmem:[#allocation8 + $0x60] ss:$8 sps:$4 sm:$0xff]  }
  0x68   :  { %v815_v37 = vld [vmem:[#allocation7 + $0xb0] ss:$12 sps:$4 sm:$0xff]   ;;  %v804_v39 = vld [vmem:[#allocation8 + $0x64] ss:$8 sps:$4 sm:$0xff]   ;;  %v355_v54 = vshrl.u32 %v354_v53, 7  ;;  %s984_s17 = smov [#allocation11]  }
  0x69   :  { %v799_v38 = vld [vmem:[#allocation8 + $0x50] ss:$8 sps:$4 sm:$0xff]   ;;  %v807_v42 = vld [vmem:[#allocation8 + $0x74] ss:$8 sps:$4 sm:$0xff]   ;;  %v817_v43 = vld [vmem:[#allocation10 + $0x8] sm:$0xff]   ;;  %s621_s18 = sshll.u32 %s984_s17, 4  ;;  %s622_s18 = int_to_ptr.vmem [resolvable:$true] %s621_s18 }
  0x6a   :  { %261 = vmatpush1.bf16.msra.mxu0 %v771_v9  ;;  %704 = vmatpush3.bf16.msra.mxu1 %v810_v21  ;;  %v805_v44 = vld [vmem:[#allocation8 + $0x70] ss:$8 sps:$4 sm:$0xff]   ;;  %v820_v49 = vld [vmem:[#allocation10 + $0x20] sm:$0xff]   ;;  %v821_v50 = vld [vmem:[#allocation10 + $0x28] sm:$0xff]   ;;  %v356_v59 = vsub.s32 0, %v355_v54  ;;  %v360_v9 = vsub.s32 1, %v355_v54  ;;  %p945_p13 = scmp.lt.s32.totalorder %s622_s18, %s622_s18 }
  0x6b   :  { %262 = vmatprep.subr.bf16.mxu0 %v772_v10  ;;  %705 = vmatprep.subr.bf16.mxu1 %v982_v1  ;;  %v1113_v45 = vld [vmem:[#allocation5] sm:$0xff]  ;;  %v818_v47 = vld [vmem:[#allocation10 + $0x10] sm:$0xff]  }
  0x6c   :  { %v335_v46 = vpack.c.bf16 %v1113_v45, %v1113_v45  ;;  %v819_v48 = vld [vmem:[#allocation10 + $0x18] sm:$0xff]   ;;  %v822_v51 = vld [vmem:[#allocation10 + $0x30] sm:$0xff]  }
  0x6d   :  { %v823_v52 = vld [vmem:[#allocation10 + $0x38] sm:$0xff]   ;;  %v352_v60 = vld [vmem:[%s1148_s4] sm:$0x3] }
  0x6e   :  { %263 = vmatpush1.bf16.msra.mxu0 %v774_v11  ;;  %706 = vmatpush3.bf16.msra.mxu1 %v811_v25  ;;  %v357_v61 = vrot.slane %v352_v60, %v356_v59  ;;  %v361_v10 = vrot.slane %v352_v60, %v360_v9 }
  0x6f   :  { %264 = vmatprep.subr.bf16.mxu0 %v775_v12  ;;  %707 = vmatprep.subr.bf16.mxu1 %v982_v1 }
  0x72   :  { %265 = vmatpush1.bf16.msra.mxu0 %v777_v13  ;;  %708 = vmatpush3.bf16.msra.mxu1 %v812_v28 }
  0x73   :  { %266 = vmatprep.subr.bf16.mxu0 %v778_v14  ;;  %709 = vmatprep.subr.bf16.mxu1 %v982_v1  ;;  %v680_v14 = vld [vmem:[%s1150_s6] ss:$0 sm:$0xff]  ;;  %s940_s6 = scalar_lea.vmem %s622_s18, 128 }
  0x74   :  { %p941_p12 = scmp.ne.s32.totalorder %s622_s18, %s940_s6  ;;  %p946_p0 = scmp.lt.s32.totalorder %s940_s6, %s940_s6 }
  0x76   :  { %267 = vmatpush1.bf16.msra.mxu0 %v780_v15  ;;  %710 = vmatpush3.bf16.msra.mxu1 %v813_v31  ;;  %p947_p1 = por %p946_p0, %p945_p13 }
  0x77   :  { %268 = vmatprep.subr.bf16.mxu0 %v781_v17  ;;  %711 = vmatprep.subr.bf16.mxu1 %v982_v1 }
  0x78   :  { %p948_p2 = pnand %p947_p1, %p941_p12 }
  0x7a   :  { %269 = vmatpush1.bf16.msra.mxu0 %v783_v19  ;;  %712 = vmatpush3.bf16.msra.mxu1 %v814_v34 }
  0x7b   :  { %444 = vmatprep.subr.bf16.mxu0 %v786_v20  ;;  %713 = vmatprep.subr.bf16.mxu1 %v982_v1 }
  0x7d   :  { %287 = vmatmul.mubr.bf16.vlgmr.msra.gmra.mrb[0].mxu0 %v92_v23 }
  0x7e   :  { %445 = vmatpush1.bf16.msra.mxu0 %v784_v22  ;;  %476 = vmatprep.mubr.bf16.mxu0 %v981_v0 }
  0x7f   :  { %446 = vmatprep.subr.bf16.mxu0 %v789_v24  ;;  %714 = vmatpush3.bf16.msra.mxu1 %v815_v37 }
  0x80   :  { %719 = vmatprep.subr.bf16.mxu1 %v982_v1 }
  0x82   :  { %447 = vmatpush1.bf16.msra.mxu0 %v787_v26  ;;  %716 = vmatmul.mubr.bf16.vlgmr.msra.gmra.mrb[0].mxu1 %v92_v23 }
  0x83   :  { %448 = vmatprep.subr.bf16.mxu0 %v792_v27  ;;  %720 = vmatpush3.bf16.msra.mxu1 %v816_v40 }
  0x84   :  { %721 = vmatprep.subr.bf16.mxu1 %v982_v1  ;;  %735 = vmatprep.mubr.msk.bf16.mxu1 %vm983_vm0, %v982_v1 }
  0x86   :  { %449 = vmatpush1.bf16.msra.mxu0 %v790_v29 }
  0x87   :  { %450 = vmatprep.subr.bf16.mxu0 %v795_v30  ;;  %722 = vmatpush3.bf16.msra.mxu1 %v817_v43 }
  0x88   :  { %723 = vmatprep.subr.bf16.mxu1 %v982_v1 }
  0x8a   :  { %451 = vmatpush1.bf16.msra.mxu0 %v793_v32 }
  0x8b   :  { %452 = vmatprep.subr.bf16.mxu0 %v798_v33  ;;  %724 = vmatpush3.bf16.msra.mxu1 %v818_v47 }
  0x8c   :  { %725 = vmatprep.subr.bf16.mxu1 %v982_v1 }
  0x8e   :  { %453 = vmatpush1.bf16.msra.mxu0 %v796_v35 }
  0x8f   :  { %454 = vmatprep.subr.bf16.mxu0 %v801_v36  ;;  %726 = vmatpush3.bf16.msra.mxu1 %v819_v48 }
  0x90   :  { %727 = vmatprep.subr.bf16.mxu1 %v982_v1 }
  0x92   :  { %455 = vmatpush1.bf16.msra.mxu0 %v799_v38 }
  0x93   :  { %456 = vmatprep.subr.bf16.mxu0 %v804_v39  ;;  %728 = vmatpush3.bf16.msra.mxu1 %v820_v49 }
  0x94   :  { %729 = vmatprep.subr.bf16.mxu1 %v982_v1 }
  0x96   :  { %457 = vmatpush1.bf16.msra.mxu0 %v802_v41 }
  0x97   :  { %458 = vmatprep.subr.bf16.mxu0 %v807_v42  ;;  %730 = vmatpush3.bf16.msra.mxu1 %v821_v50 }
  0x98   :  { %731 = vmatprep.subr.bf16.mxu1 %v982_v1 }
  0x9a   :  { %459 = vmatpush1.bf16.msra.mxu0 %v805_v44 }
  0x9b   :  { %732 = vmatpush3.bf16.msra.mxu1 %v822_v51 }
  0x9c   :  { %733 = vmatprep.subr.bf16.mxu1 %v982_v1 }
  0x9d   :  { %477 = vmatmul.mubr.bf16.vlgmr.msra.gmra.mrb[0].mxu0 %v335_v46 }
  0x9f   :  { %734 = vmatpush3.bf16.msra.mxu1 %v823_v52 }
 0x155   :  { %v329_v55 = vpop.f32.mrb[0].mxu1 }
 0x156   :  { %v717_v56 = vpop.f32.mrb[1].mxu1 }
 0x157   :  { %v332_v57 = vpop.f32.mrb[2].mxu1 }
 0x158   :  { %v718_v58 = vpop.f32.mrb[3].mxu1 }
 0x170   :  { %v478_v62 = vpop.f32.mrb[0].mxu0 }
 0x171   :  { %v479_v63 = vadd.f32 %v478_v62, %v357_v61  ;;  %v480_v0 = vpop.f32.mrb[1].mxu0 }
 0x172   :  { %v482_v2 = vpop.f32.mrb[2].mxu0  ;;  %v481_v11 = vadd.f32 %v480_v0, %v361_v10 }
 0x173   :  { %v486_v3 = vmul.f32 0.5, %v479_v63  ;;  %v483_v1 = vpop.f32.mrb[3].mxu0 }
 0x174   :  { %v491_v12 = vmul.f32 0.5, %v481_v11 }
 0x175   :  { %824 = vtanh.f32 %v486_v3 }
 0x176   :  { %826 = vtanh.f32 %v491_v12 }
 0x17f   :  { %v825_v4 = vpop.eup %824 }
 0x180   :  { %v488_v5 = vadd.f32 1.0, %v825_v4  ;;  %v827_v20 = vpop.eup %826 }
 0x181   :  { %v493_v21 = vadd.f32 1.0, %v827_v20 }
 0x182   :  { %v489_v6 = vmul.f32 0.5, %v488_v5 }
 0x183   :  { %v494_v23 = vmul.f32 0.5, %v493_v21 }
 0x184   :  { %v495_v7 = vmul.f32 %v489_v6, %v1113_v45 }
 0x186   :  { %v496_v8 = vpack.c.bf16 %v495_v7, %v495_v7 }
 0x188   :  { %736 = vmatmul.mubr.bf16.vlgmr.msra.gmra.mrb[4].mxu1 %v496_v8 }
 0x25b   :  { %v595_v13 = vpop.f32.mrb[4].mxu1 }
 0x25c   :  { %v601_v15 = vadd.f32 %v595_v13, %v329_v55  ;;  %v737_v16 = vpop.f32.mrb[5].mxu1 }
 0x25d   :  { %v598_v17 = vpop.f32.mrb[6].mxu1 }
 0x25e   :  { %v609_v18 = vadd.f32 %v680_v14, %v601_v15  ;;  %v738_v19 = vpop.f32.mrb[7].mxu1 }
 0x260   :  { %828 = vtanh.f32 %v609_v18 }
 0x26a   :  { %v829_v22 = vpop.eup %828 }
 0x26b   :  { %v611_v24 = vsub.f32 %v829_v22, %v1113_v45 }
 0x26d   :  { %v612_v25 = vmul.f32 %v611_v24, %v494_v23 }
 0x26f   :  { %v613_v26 = vadd.f32 %v612_v25, %v1113_v45 }
 0x271   :  { %614 = vst [vmem:[#allocation11] sm:$0xff] %v613_v26 }
 0x272   :  { %951 = shalt.err (!%p948_p2)
}
 0x273   :  { %s952_s21 = scalar_lea.hbm %s1151_s7, 128 }
 0x274   :  { %p953_p3 = scmp.ne.s32.totalorder %s1151_s7, %s952_s21  ;;  %p956_p4 = scmp.lt.u32.totalorder %s952_s21, %s1151_s7 }
 0x276   :  { %p958_p5 = pnand %p956_p4, %p953_p3 }
 0x278   :  { %961 = shalt.err (!%p958_p5)
}
 0x279   :  { %624 = dma.vmem_to_hbm [thread:$0]  %s622_s18, 128, %s1151_s7, [#allocation4]  }
 0x27a   :  { %968 = dma.done.wait [#allocation4], 128  }
 0x27b   :  { %969 = vsyncadd [#allocation4], 4294967168 }
 0x27c   :  { %628 = vsyncpa [#allocation3], 1 }
 0x27d   :  { %629 = vsyncpa [#allocation6], 1 }
 0x27e   :  { %630 = vsyncpa [#allocation9], 1 }
 0x27f   :  { %631 = vsyncpa [#allocation4], 1 }

// kernel: tpu_custom_call.1
= control target key start
LH: loop header
LB: loop body
LE: loop exit
PB: predicated region body
PF: predicated region fallthrough
CT: control target
= control target key end

     0   :  { %12 = vsyncpa [#allocation3], 0  ;;  %s1144_s0 = inlined_call_operand.hbm [shape: bf16[8,128], index: 0, kind: input, shape index: {}]   ;;  %s1145_s1 = inlined_call_operand.hbm [shape: f32[8,128], index: 1, kind: input, shape index: {}]   ;;  %s1146_s2 = inlined_call_operand.hbm [shape: bf16[128,384], index: 2, kind: input, shape index: {}]   ;;  %s1147_s3 = inlined_call_operand.hbm [shape: bf16[128,256], index: 3, kind: input, shape index: {}]   ;;  %s1148_s4 = inlined_call_operand.vmem [shape: f32[1,256], index: 4, kind: input, shape index: {}]   ;;  %s1149_s5 = inlined_call_operand.hbm [shape: bf16[128,128], index: 5, kind: input, shape index: {}]   ;;  %s1150_s6 = inlined_call_operand.vmem [shape: f32[1,128], index: 6, kind: input, shape index: {}]   ;;  %s1151_s7 = inlined_call_operand.hbm [shape: f32[8,128], index: 7, kind: output, shape index: {}]  }
   0x1   :  { %13 = vsyncpa [#allocation6], 0 }
   0x2   :  { %14 = vsyncpa [#allocation9], 0 }
   0x3   :  { %15 = vsyncpa [#allocation4], 0  ;;  %s970_s24 = smov [#allocation5]   ;;  %s971_s26 = smov [#allocation8]  }
   0x4   :  { %s32_s25 = sshll.u32 %s970_s24, 4  ;;  %s53_s27 = sshll.u32 %s971_s26, 4  ;;  %s33_s25 = int_to_ptr.vmem [resolvable:$true] %s32_s25  ;;  %s1025_s27 = int_to_ptr.vmem [resolvable:$true] %s53_s27 }
   0x5   :  { %s830_s30 = scalar_lea.hbm %s1145_s1, 128 }
   0x6   :  { %p831_p0 = scmp.ne.s32.totalorder %s1145_s1, %s830_s30  ;;  %p834_p1 = scmp.lt.u32.totalorder %s830_s30, %s1145_s1 }
   0x8   :  { %p836_p2 = pnand %p834_p1, %p831_p0 }
   0xa   :  { %839 = shalt.err (!%p836_p2)
}
   0xb   :  { %s840_s12 = scalar_lea.vmem %s33_s25, 128  ;;  %p845_p4 = scmp.lt.s32.totalorder %s33_s25, %s33_s25 }
   0xc   :  { %p841_p3 = scmp.ne.s32.totalorder %s33_s25, %s840_s12  ;;  %p846_p5 = scmp.lt.s32.totalorder %s840_s12, %s840_s12 }
   0xe   :  { %p847_p6 = por %p846_p5, %p845_p4 }
  0x10   :  { %p848_p7 = pnand %p847_p6, %p841_p3 }
  0x12   :  { %851 = shalt.err (!%p848_p7)
}
  0x13   :  { %35 = dma.hbm_to_vmem [thread:$0]  %s1145_s1, 128, %s33_s25, [#allocation6]  }
  0x14   :  { %s852_s17 = scalar_lea.hbm %s1147_s3, 2048 }
  0x15   :  { %p853_p8 = scmp.ne.s32.totalorder %s1147_s3, %s852_s17  ;;  %p856_p9 = scmp.lt.u32.totalorder %s852_s17, %s1147_s3 }
  0x17   :  { %p858_p10 = pnand %p856_p9, %p853_p8 }
  0x19   :  { %861 = shalt.err (!%p858_p10)
}
  0x1a   :  { %s862_s22 = scalar_lea.vmem %s1025_s27, 2048  ;;  %p867_p12 = scmp.lt.s32.totalorder %s1025_s27, %s1025_s27 }
  0x1b   :  { %p863_p11 = scmp.ne.s32.totalorder %s1025_s27, %s862_s22  ;;  %p868_p13 = scmp.lt.s32.totalorder %s862_s22, %s862_s22 }
  0x1d   :  { %p869_p0 = por %p868_p13, %p867_p12 }
  0x1f   :  { %p870_p1 = pnand %p869_p0, %p863_p11 }
  0x21   :  { %873 = shalt.err (!%p870_p1)
}
  0x22   :  { %s972_s1 = smov 128   ;;  %s973_s23 = smov 8  }
  0x23   :  { %59 = dma.hbm_to_vmem [thread:$0]  %s1147_s3, 2048, %s1025_s27, [#allocation9], %s972_s1, %s972_s1, %s973_s23  }
  0x24   :  { %s974_s26 = smov [#allocation2]   ;;  %s975_s29 = smov [#allocation7]  }
  0x25   :  { %s22_s28 = sshll.u32 %s974_s26, 4  ;;  %s41_s30 = sshll.u32 %s975_s29, 4  ;;  %s23_s28 = int_to_ptr.vmem [resolvable:$true] %s22_s28  ;;  %s1056_s30 = int_to_ptr.vmem [resolvable:$true] %s41_s30 }
  0x26   :  { %s874_s10 = scalar_lea.hbm %s1144_s0, 64 }
  0x27   :  { %p875_p2 = scmp.ne.s32.totalorder %s1144_s0, %s874_s10  ;;  %p878_p3 = scmp.lt.u32.totalorder %s874_s10, %s1144_s0 }
  0x29   :  { %p880_p4 = pnand %p878_p3, %p875_p2 }
  0x2b   :  { %883 = shalt.err (!%p880_p4)
}
  0x2c   :  { %s884_s3 = scalar_lea.vmem %s23_s28, 64  ;;  %p889_p6 = scmp.lt.s32.totalorder %s23_s28, %s23_s28 }
  0x2d   :  { %p885_p5 = scmp.ne.s32.totalorder %s23_s28, %s884_s3  ;;  %p890_p7 = scmp.lt.s32.totalorder %s884_s3, %s884_s3 }
  0x2f   :  { %p891_p8 = por %p890_p7, %p889_p6 }
  0x31   :  { %p892_p9 = pnand %p891_p8, %p885_p5 }
  0x33   :  { %895 = shalt.err (!%p892_p9)
}
  0x34   :  { %25 = dma.hbm_to_vmem [thread:$0]  %s1144_s0, 64, %s23_s28, [#allocation3]  }
  0x35   :  { %s896_s18 = scalar_lea.hbm %s1146_s2, 3072 }
  0x36   :  { %p897_p10 = scmp.ne.s32.totalorder %s1146_s2, %s896_s18  ;;  %p900_p11 = scmp.lt.u32.totalorder %s896_s18, %s1146_s2 }
  0x38   :  { %p902_p12 = pnand %p900_p11, %p897_p10 }
  0x3a   :  { %905 = shalt.err (!%p902_p12)
}
  0x3b   :  { %s906_s1 = scalar_lea.vmem %s1056_s30, 3072  ;;  %p911_p0 = scmp.lt.s32.totalorder %s1056_s30, %s1056_s30 }
  0x3c   :  { %p907_p13 = scmp.ne.s32.totalorder %s1056_s30, %s906_s1  ;;  %p912_p1 = scmp.lt.s32.totalorder %s906_s1, %s906_s1 }
  0x3e   :  { %p913_p2 = por %p912_p1, %p911_p0 }
  0x40   :  { %p914_p3 = pnand %p913_p2, %p907_p13 }
  0x42   :  { %917 = shalt.err (!%p914_p3)
}
  0x43   :  { %s976_s0 = smov 192   ;;  %s977_s23 = smov 12  }
  0x44   :  { %47 = dma.hbm_to_vmem [thread:$0]  %s1146_s2, 3072, %s1056_s30, [#allocation6], %s976_s0, %s976_s0, %s977_s23  }
  0x45   :  { %s978_s26 = smov [#allocation10]   ;;  %s918_s9 = scalar_lea.hbm %s1149_s5, 1024 }
  0x46   :  { %s67_s28 = sshll.u32 %s978_s26, 4  ;;  %p919_p4 = scmp.ne.s32.totalorder %s1149_s5, %s918_s9  ;;  %s68_s28 = int_to_ptr.vmem [resolvable:$true] %s67_s28 }
  0x47   :  { %p922_p5 = scmp.lt.u32.totalorder %s918_s9, %s1149_s5 }
  0x49   :  { %p924_p6 = pnand %p922_p5, %p919_p4 }
  0x4b   :  { %927 = shalt.err (!%p924_p6)
}
  0x4c   :  { %s928_s14 = scalar_lea.vmem %s68_s28, 1024  ;;  %p933_p8 = scmp.lt.s32.totalorder %s68_s28, %s68_s28 }
  0x4d   :  { %p929_p7 = scmp.ne.s32.totalorder %s68_s28, %s928_s14  ;;  %p934_p9 = scmp.lt.s32.totalorder %s928_s14, %s928_s14 }
  0x4f   :  { %p935_p10 = por %p934_p9, %p933_p8 }
  0x51   :  { %p936_p11 = pnand %p935_p10, %p929_p7 }
  0x53   :  { %939 = shalt.err (!%p936_p11)
}
  0x54   :  { %s979_s2 = smov 64   ;;  %s980_s30 = smov 4  }
  0x55   :  { %73 = dma.hbm_to_vmem [thread:$0]  %s1149_s5, 1024, %s68_s28, [#allocation9], %s979_s2, %s979_s2, %s980_s30  }
  0x56   :  { %962 = dma.done.wait [#allocation3], 64  }
  0x57   :  { %963 = vsyncadd [#allocation3], 4294967232 }
  0x58   :  { %964 = dma.done.wait [#allocation6], 3200  }
  0x59   :  { %965 = vsyncadd [#allocation6], 4294964096 }
  0x5a   :  { %966 = dma.done.wait [#allocation9], 3072  }
  0x5b   :  { %967 = vsyncadd [#allocation9], 4294964224  ;;  %v981_v0 = vmov 0   ;;  %v982_v1 = vmov 0.0   ;;  %vm983_vm0 = vmmov 0   ;;  %v816_v40 = vld [vmem:[#allocation10] sm:$0xff]   ;;  %v354_v53 = vlaneseq }
  0x5c   :  { %286 = vmatprep.mubr.bf16.mxu0 %v981_v0  ;;  %699 = vmatprep.subr.bf16.mxu1 %v982_v1  ;;  %v760_v2 = vld [vmem:[#allocation7 + $0x4] ss:$12 sps:$4 sm:$0xff]   ;;  %v762_v3 = vld [vmem:[#allocation7] ss:$12 sps:$4 sm:$0xff]   ;;  %v763_v4 = vld [vmem:[#allocation7 + $0x1c] ss:$12 sps:$4 sm:$0xff]  }
  0x5d   :  { %715 = vmatprep.mubr.msk.bf16.mxu1 %vm983_vm0, %v982_v1  ;;  %254 = vmatprep.subr.bf16.mxu0 %v760_v2  ;;  %v765_v5 = vld [vmem:[#allocation7 + $0x18] ss:$12 sps:$4 sm:$0xff]   ;;  %v766_v6 = vld [vmem:[#allocation7 + $0x34] ss:$12 sps:$4 sm:$0xff]   ;;  %v768_v7 = vld [vmem:[#allocation7 + $0x30] ss:$12 sps:$4 sm:$0xff]  }
  0x5e   :  { %255 = vmatpush1.bf16.msra.mxu0 %v762_v3  ;;  %v769_v8 = vld [vmem:[#allocation7 + $0x4c] ss:$12 sps:$4 sm:$0xff]   ;;  %v771_v9 = vld [vmem:[#allocation7 + $0x48] ss:$12 sps:$4 sm:$0xff]   ;;  %v772_v10 = vld [vmem:[#allocation7 + $0x64] ss:$12 sps:$4 sm:$0xff]  }
  0x5f   :  { %256 = vmatprep.subr.bf16.mxu0 %v763_v4  ;;  %v774_v11 = vld [vmem:[#allocation7 + $0x60] ss:$12 sps:$4 sm:$0xff]   ;;  %v775_v12 = vld [vmem:[#allocation7 + $0x7c] ss:$12 sps:$4 sm:$0xff]   ;;  %v777_v13 = vld [vmem:[#allocation7 + $0x78] ss:$12 sps:$4 sm:$0xff]  }
  0x60   :  { %v778_v14 = vld [vmem:[#allocation7 + $0x94] ss:$12 sps:$4 sm:$0xff]   ;;  %v780_v15 = vld [vmem:[#allocation7 + $0x90] ss:$12 sps:$4 sm:$0xff]   ;;  %v781_v17 = vld [vmem:[#allocation7 + $0xac] ss:$12 sps:$4 sm:$0xff]  }
  0x61   :  { %v808_v16 = vld [vmem:[#allocation7 + $0x8] ss:$12 sps:$4 sm:$0xff]   ;;  %v809_v18 = vld [vmem:[#allocation7 + $0x20] ss:$12 sps:$4 sm:$0xff]   ;;  %v810_v21 = vld [vmem:[#allocation7 + $0x38] ss:$12 sps:$4 sm:$0xff]  }
  0x62   :  { %257 = vmatpush1.bf16.msra.mxu0 %v765_v5  ;;  %700 = vmatpush3.bf16.msra.mxu1 %v808_v16  ;;  %v783_v19 = vld [vmem:[#allocation7 + $0xa8] ss:$12 sps:$4 sm:$0xff]   ;;  %v786_v20 = vld [vmem:[#allocation8 + $0x4] ss:$8 sps:$4 sm:$0xff]   ;;  %v811_v25 = vld [vmem:[#allocation7 + $0x50] ss:$12 sps:$4 sm:$0xff]  }
  0x63   :  { %258 = vmatprep.subr.bf16.mxu0 %v766_v6  ;;  %701 = vmatprep.subr.bf16.mxu1 %v982_v1  ;;  %v784_v22 = vld [vmem:[#allocation8] ss:$8 sps:$4 sm:$0xff]   ;;  %v92_v23 = vld [vmem:[#allocation2] sm:$0xf]  ;;  %v787_v26 = vld [vmem:[#allocation8 + $0x10] ss:$8 sps:$4 sm:$0xff]  }
  0x64   :  { %v789_v24 = vld [vmem:[#allocation8 + $0x14] ss:$8 sps:$4 sm:$0xff]   ;;  %v792_v27 = vld [vmem:[#allocation8 + $0x24] ss:$8 sps:$4 sm:$0xff]   ;;  %v790_v29 = vld [vmem:[#allocation8 + $0x20] ss:$8 sps:$4 sm:$0xff]  }
  0x65   :  { %v812_v28 = vld [vmem:[#allocation7 + $0x68] ss:$12 sps:$4 sm:$0xff]   ;;  %v813_v31 = vld [vmem:[#allocation7 + $0x80] ss:$12 sps:$4 sm:$0xff]   ;;  %v793_v32 = vld [vmem:[#allocation8 + $0x30] ss:$8 sps:$4 sm:$0xff]  }
  0x66   :  { %259 = vmatpush1.bf16.msra.mxu0 %v768_v7  ;;  %702 = vmatpush3.bf16.msra.mxu1 %v809_v18  ;;  %v795_v30 = vld [vmem:[#allocation8 + $0x34] ss:$8 sps:$4 sm:$0xff]   ;;  %v798_v33 = vld [vmem:[#allocation8 + $0x44] ss:$8 sps:$4 sm:$0xff]   ;;  %v796_v35 = vld [vmem:[#allocation8 + $0x40] ss:$8 sps:$4 sm:$0xff]  }
  0x67   :  { %260 = vmatprep.subr.bf16.mxu0 %v769_v8  ;;  %703 = vmatprep.subr.bf16.mxu1 %v982_v1  ;;  %v814_v34 = vld [vmem:[#allocation7 + $0x98] ss:$12 sps:$4 sm:$0xff]   ;;  %v801_v36 = vld [vmem:[#allocation8 + $0x54] ss:$8 sps:$4 sm:$0xff]   ;;  %v802_v41 = vld [vmem:[#allocation8 + $0x60] ss:$8 sps:$4 sm:$0xff]  }
  0x68   :  { %v815_v37 = vld [vmem:[#allocation7 + $0xb0] ss:$12 sps:$4 sm:$0xff]   ;;  %v804_v39 = vld [vmem:[#allocation8 + $0x64] ss:$8 sps:$4 sm:$0xff]   ;;  %v355_v54 = vshrl.u32 %v354_v53, 7  ;;  %s984_s17 = smov [#allocation11]  }
  0x69   :  { %v799_v38 = vld [vmem:[#allocation8 + $0x50] ss:$8 sps:$4 sm:$0xff]   ;;  %v807_v42 = vld [vmem:[#allocation8 + $0x74] ss:$8 sps:$4 sm:$0xff]   ;;  %v817_v43 = vld [vmem:[#allocation10 + $0x8] sm:$0xff]   ;;  %s621_s18 = sshll.u32 %s984_s17, 4  ;;  %s622_s18 = int_to_ptr.vmem [resolvable:$true] %s621_s18 }
  0x6a   :  { %261 = vmatpush1.bf16.msra.mxu0 %v771_v9  ;;  %704 = vmatpush3.bf16.msra.mxu1 %v810_v21  ;;  %v805_v44 = vld [vmem:[#allocation8 + $0x70] ss:$8 sps:$4 sm:$0xff]   ;;  %v820_v49 = vld [vmem:[#allocation10 + $0x20] sm:$0xff]   ;;  %v821_v50 = vld [vmem:[#allocation10 + $0x28] sm:$0xff]   ;;  %v356_v59 = vsub.s32 0, %v355_v54  ;;  %v360_v9 = vsub.s32 1, %v355_v54  ;;  %p945_p13 = scmp.lt.s32.totalorder %s622_s18, %s622_s18 }
  0x6b   :  { %262 = vmatprep.subr.bf16.mxu0 %v772_v10  ;;  %705 = vmatprep.subr.bf16.mxu1 %v982_v1  ;;  %v1113_v45 = vld [vmem:[#allocation5] sm:$0xff]  ;;  %v818_v47 = vld [vmem:[#allocation10 + $0x10] sm:$0xff]  }
  0x6c   :  { %v335_v46 = vpack.c.bf16 %v1113_v45, %v1113_v45  ;;  %v819_v48 = vld [vmem:[#allocation10 + $0x18] sm:$0xff]   ;;  %v822_v51 = vld [vmem:[#allocation10 + $0x30] sm:$0xff]  }
  0x6d   :  { %v823_v52 = vld [vmem:[#allocation10 + $0x38] sm:$0xff]   ;;  %v352_v60 = vld [vmem:[%s1148_s4] sm:$0x3] }
  0x6e   :  { %263 = vmatpush1.bf16.msra.mxu0 %v774_v11  ;;  %706 = vmatpush3.bf16.msra.mxu1 %v811_v25  ;;  %v357_v61 = vrot.slane %v352_v60, %v356_v59  ;;  %v361_v10 = vrot.slane %v352_v60, %v360_v9 }
  0x6f   :  { %264 = vmatprep.subr.bf16.mxu0 %v775_v12  ;;  %707 = vmatprep.subr.bf16.mxu1 %v982_v1 }
  0x72   :  { %265 = vmatpush1.bf16.msra.mxu0 %v777_v13  ;;  %708 = vmatpush3.bf16.msra.mxu1 %v812_v28 }
  0x73   :  { %266 = vmatprep.subr.bf16.mxu0 %v778_v14  ;;  %709 = vmatprep.subr.bf16.mxu1 %v982_v1  ;;  %v680_v14 = vld [vmem:[%s1150_s6] ss:$0 sm:$0xff]  ;;  %s940_s6 = scalar_lea.vmem %s622_s18, 128 }
  0x74   :  { %p941_p12 = scmp.ne.s32.totalorder %s622_s18, %s940_s6  ;;  %p946_p0 = scmp.lt.s32.totalorder %s940_s6, %s940_s6 }
  0x76   :  { %267 = vmatpush1.bf16.msra.mxu0 %v780_v15  ;;  %710 = vmatpush3.bf16.msra.mxu1 %v813_v31  ;;  %p947_p1 = por %p946_p0, %p945_p13 }
  0x77   :  { %268 = vmatprep.subr.bf16.mxu0 %v781_v17  ;;  %711 = vmatprep.subr.bf16.mxu1 %v982_v1 }
  0x78   :  { %p948_p2 = pnand %p947_p1, %p941_p12 }
  0x7a   :  { %269 = vmatpush1.bf16.msra.mxu0 %v783_v19  ;;  %712 = vmatpush3.bf16.msra.mxu1 %v814_v34 }
  0x7b   :  { %444 = vmatprep.subr.bf16.mxu0 %v786_v20  ;;  %713 = vmatprep.subr.bf16.mxu1 %v982_v1 }
  0x7d   :  { %287 = vmatmul.mubr.bf16.vlgmr.msra.gmra.mrb[0].mxu0 %v92_v23 }
  0x7e   :  { %445 = vmatpush1.bf16.msra.mxu0 %v784_v22  ;;  %476 = vmatprep.mubr.bf16.mxu0 %v981_v0 }
  0x7f   :  { %446 = vmatprep.subr.bf16.mxu0 %v789_v24  ;;  %714 = vmatpush3.bf16.msra.mxu1 %v815_v37 }
  0x80   :  { %719 = vmatprep.subr.bf16.mxu1 %v982_v1 }
  0x82   :  { %447 = vmatpush1.bf16.msra.mxu0 %v787_v26  ;;  %716 = vmatmul.mubr.bf16.vlgmr.msra.gmra.mrb[0].mxu1 %v92_v23 }
  0x83   :  { %448 = vmatprep.subr.bf16.mxu0 %v792_v27  ;;  %720 = vmatpush3.bf16.msra.mxu1 %v816_v40 }
  0x84   :  { %721 = vmatprep.subr.bf16.mxu1 %v982_v1  ;;  %735 = vmatprep.mubr.msk.bf16.mxu1 %vm983_vm0, %v982_v1 }
  0x86   :  { %449 = vmatpush1.bf16.msra.mxu0 %v790_v29 }
  0x87   :  { %450 = vmatprep.subr.bf16.mxu0 %v795_v30  ;;  %722 = vmatpush3.bf16.msra.mxu1 %v817_v43 }
  0x88   :  { %723 = vmatprep.subr.bf16.mxu1 %v982_v1 }
  0x8a   :  { %451 = vmatpush1.bf16.msra.mxu0 %v793_v32 }
  0x8b   :  { %452 = vmatprep.subr.bf16.mxu0 %v798_v33  ;;  %724 = vmatpush3.bf16.msra.mxu1 %v818_v47 }
  0x8c   :  { %725 = vmatprep.subr.bf16.mxu1 %v982_v1 }
  0x8e   :  { %453 = vmatpush1.bf16.msra.mxu0 %v796_v35 }
  0x8f   :  { %454 = vmatprep.subr.bf16.mxu0 %v801_v36  ;;  %726 = vmatpush3.bf16.msra.mxu1 %v819_v48 }
  0x90   :  { %727 = vmatprep.subr.bf16.mxu1 %v982_v1 }
  0x92   :  { %455 = vmatpush1.bf16.msra.mxu0 %v799_v38 }
  0x93   :  { %456 = vmatprep.subr.bf16.mxu0 %v804_v39  ;;  %728 = vmatpush3.bf16.msra.mxu1 %v820_v49 }
  0x94   :  { %729 = vmatprep.subr.bf16.mxu1 %v982_v1 }
  0x96   :  { %457 = vmatpush1.bf16.msra.mxu0 %v802_v41 }
  0x97   :  { %458 = vmatprep.subr.bf16.mxu0 %v807_v42  ;;  %730 = vmatpush3.bf16.msra.mxu1 %v821_v50 }
  0x98   :  { %731 = vmatprep.subr.bf16.mxu1 %v982_v1 }
  0x9a   :  { %459 = vmatpush1.bf16.msra.mxu0 %v805_v44 }
  0x9b   :  { %732 = vmatpush3.bf16.msra.mxu1 %v822_v51 }
  0x9c   :  { %733 = vmatprep.subr.bf16.mxu1 %v982_v1 }
  0x9d   :  { %477 = vmatmul.mubr.bf16.vlgmr.msra.gmra.mrb[0].mxu0 %v335_v46 }
  0x9f   :  { %734 = vmatpush3.bf16.msra.mxu1 %v823_v52 }
 0x155   :  { %v329_v55 = vpop.f32.mrb[0].mxu1 }
 0x156   :  { %v717_v56 = vpop.f32.mrb[1].mxu1 }
 0x157   :  { %v332_v57 = vpop.f32.mrb[2].mxu1 }
 0x158   :  { %v718_v58 = vpop.f32.mrb[3].mxu1 }
 0x170   :  { %v478_v62 = vpop.f32.mrb[0].mxu0 }
 0x171   :  { %v479_v63 = vadd.f32 %v478_v62, %v357_v61  ;;  %v480_v0 = vpop.f32.mrb[1].mxu0 }
 0x172   :  { %v482_v2 = vpop.f32.mrb[2].mxu0  ;;  %v481_v11 = vadd.f32 %v480_v0, %v361_v10 }
 0x173   :  { %v486_v3 = vmul.f32 0.5, %v479_v63  ;;  %v483_v1 = vpop.f32.mrb[3].mxu0 }
 0x174   :  { %v491_v12 = vmul.f32 0.5, %v481_v11 }
 0x175   :  { %824 = vtanh.f32 %v486_v3 }
 0x176   :  { %826 = vtanh.f32 %v491_v12 }
 0x17f   :  { %v825_v4 = vpop.eup %824 }
 0x180   :  { %v488_v5 = vadd.f32 1.0, %v825_v4  ;;  %v827_v20 = vpop.eup %826 }
 0x181   :  { %v493_v21 = vadd.f32 1.0, %v827_v20 }
 0x182   :  { %v489_v6 = vmul.f32 0.5, %v488_v5 }
 0x183   :  { %v494_v23 = vmul.f32 0.5, %v493_v21 }
 0x184   :  { %v495_v7 = vmul.f32 %v489_v6, %v1113_v45 }
 0x186   :  { %v496_v8 = vpack.c.bf16 %v495_v7, %v495_v7 }
 0x188   :  { %736 = vmatmul.mubr.bf16.vlgmr.msra.gmra.mrb[4].mxu1 %v496_v8 }
 0x25b   :  { %v595_v13 = vpop.f32.mrb[4].mxu1 }
 0x25c   :  { %v601_v15 = vadd.f32 %v595_v13, %v329_v55  ;;  %v737_v16 = vpop.f32.mrb[5].mxu1 }
 0x25d   :  { %v598_v17 = vpop.f32.mrb[6].mxu1 }
 0x25e   :  { %v609_v18 = vadd.f32 %v680_v14, %v601_v15  ;;  %v738_v19 = vpop.f32.mrb[7].mxu1 }
 0x260   :  { %828 = vtanh.f32 %v609_v18 }
 0x26a   :  { %v829_v22 = vpop.eup %828 }
 0x26b   :  { %v611_v24 = vsub.f32 %v829_v22, %v1113_v45 }
 0x26d   :  { %v612_v25 = vmul.f32 %v611_v24, %v494_v23 }
 0x26f   :  { %v613_v26 = vadd.f32 %v612_v25, %v1113_v45 }
 0x271   :  { %614 = vst [vmem:[#allocation11] sm:$0xff] %v613_v26 }
 0x272   :  { %951 = shalt.err (!%p948_p2)
}
 0x273   :  { %s952_s21 = scalar_lea.hbm %s1151_s7, 128 }
 0x274   :  { %p953_p3 = scmp.ne.s32.totalorder %s1151_s7, %s952_s21  ;;  %p956_p4 = scmp.lt.u32.totalorder %s952_s21, %s1151_s7 }
 0x276   :  { %p958_p5 = pnand %p956_p4, %p953_p3 }
 0x278   :  { %961 = shalt.err (!%p958_p5)
}
 0x279   :  { %624 = dma.vmem_to_hbm [thread:$0]  %s622_s18, 128, %s1151_s7, [#allocation4]  }
 0x27a   :  { %968 = dma.done.wait [#allocation4], 128  }
 0x27b   :  { %969 = vsyncadd [#allocation4], 4294967168 }
 0x27c   :  { %628 = vsyncpa [#allocation3], 1 }
 0x27d   :  { %629 = vsyncpa [#allocation6], 1 }
 0x27e   :  { %630 = vsyncpa [#allocation9], 1 }
 0x27f   :  { %631 = vsyncpa [#allocation4], 1 }

</bundles_post_ra>
